<compile_context>
chip_gen: v6e
topology: v6e:2x2x1
jax: 0.10.0
libtpu: 0.0.40
codegen_flags: <defaults>
</compile_context>

<pallas_src>
import functools

import jax
import jax.numpy as jnp
from jax.experimental import pallas as pl
from jax.experimental.pallas import tpu as pltpu

# ----------------------- static hierarchy config -----------------------
HIDDEN = 32
B = 8
PATHS = [[0, 0], [0, 1], [1, 2], [1, 3]]     # PATHS[leaf][lvl] = node index at level lvl
NUM_LEVELS = 2
N_LVL = [2, 4]                               # num_labels_per_lvl
OFFSETS = [0, 2]                             # packed-column offset of each level's nodes
N_TOTAL = sum(N_LVL)                         # 6 nodes total
NUM_LEAF = len(PATHS)                        # 4 leaf classes
NPAD = 128                                   # lane-dense padding of the node axis
LEAF_PATHS_ABS = [[OFFSETS[l] + p[l] for l in range(NUM_LEVELS)] for p in PATHS]
# static sanity: every path index must land inside the real (non-padded) node columns
assert all(0 <= idx < N_TOTAL for path in LEAF_PATHS_ABS for idx in path)
assert N_TOTAL <= NPAD and NUM_LEAF <= NPAD

NEG = -1e30          # additive lane mask (finite so 0 * NEG == 0, never NaN)
LOSS_ROWS = 8        # sublane-aligned loss slot per grid step


# ----------------------------- Pallas kernel ---------------------------
def lcpn_kernel(x_ref, w_ref, b_ref, lab_ref, leaf_ref, loss_ref, *, b_total):
    blk = x_ref.shape[0]

    # --- every per-node Linear(H, 1) as one MXU matmul (bf16 operands, f32 acc) ---
    logits = jnp.dot(x_ref[...].astype(jnp.bfloat16), w_ref[...],
                     preferred_element_type=jnp.float32) + b_ref[...]      # (blk, NPAD)
    sig = jax.nn.sigmoid(logits)                                           # f32 elementwise

    col = jax.lax.broadcasted_iota(jnp.int32, (blk, NPAD), 1)

    # --- predict_along_path on the MXU: per-level 0/1 selection matrices ---
    srow = jax.lax.broadcasted_iota(jnp.int32, (NPAD, NPAD), 0)
    scol = jax.lax.broadcasted_iota(jnp.int32, (NPAD, NPAD), 1)
    leaf = None
    for lvl in range(NUM_LEVELS):
        sel = jnp.zeros((NPAD, NPAD), jnp.float32)
        for j, path in enumerate(LEAF_PATHS_ABS):
            sel = jnp.where((srow == path[lvl]) & (scol == j), 1.0, sel)
        factor = jnp.dot(sig, sel, preferred_element_type=jnp.float32)     # (blk, NPAD)
        leaf = factor if leaf is None else leaf * factor
    leaf_ref[...] = leaf            # lanes >= NUM_LEAF are exactly 0 (empty sel columns)

    # --- one-hot targets rebuilt from the tiny (blk, 2) int32 label block ---
    labs = lab_ref[...]
    lab0 = labs[:, 0:1]             # level-0 node index
    lab1 = labs[:, 1:2]             # level-1 node index (== leaf CE target column)
    oh0 = jnp.where(col == OFFSETS[0] + lab0, 1.0, 0.0)
    oh1 = jnp.where(col == OFFSETS[1] + lab1, 1.0, 0.0)
    ohl = jnp.where(col == lab1, 1.0, 0.0)

    # --- full-lane masked cross entropy per head (no narrow slices) ---
    m0 = jnp.where((col >= OFFSETS[0]) & (col < OFFSETS[0] + N_LVL[0]), 0.0, NEG)
    m1 = jnp.where((col >= OFFSETS[1]) & (col < OFFSETS[1] + N_LVL[1]), 0.0, NEG)
    ml = jnp.where(col < NUM_LEAF, 0.0, NEG)

    def ce_rows(vals, add_mask, onehot):            # -> (blk, 1)
        lg = vals + add_mask
        mx = jnp.max(lg, axis=-1, keepdims=True)
        lse = mx + jnp.log(jnp.sum(jnp.exp(lg - mx), axis=-1, keepdims=True))
        tgt = jnp.sum(onehot * lg, axis=-1, keepdims=True)
        return lse - tgt

    ce = ce_rows(logits, m0, oh0) + ce_rows(logits, m1, oh1) + ce_rows(leaf, ml, ohl)

    rid = jax.lax.broadcasted_iota(jnp.int32, (blk, 1), 0)
    row_valid = jnp.where(pl.program_id(0) * blk + rid < b_total, 1.0, 0.0)
    block_sum = jnp.sum(ce * row_valid, keepdims=True)                     # (1, 1)
    loss_ref[...] = jnp.zeros((LOSS_ROWS, NPAD), jnp.float32) + block_sum  # lane-dense slot


# ------------------------------- wrapper --------------------------------
def lcpn_head_forward(x, labels, w_packed_bf16, b_packed):
    b_total, hidden = x.shape

    # update_label_per_lvl: static leaf-label -> per-level node index lookup
    lvl_maps = jnp.asarray(PATHS, jnp.int32)          # (NUM_LEAF, NUM_LEVELS)
    labs = lvl_maps[labels]                           # (B, NUM_LEVELS) int32

    # batch tiling: sublane-aligned blocks (up to 256 rows/step), "parallel" for v7x 2xTC
    blk = min(256, ((b_total + 7) // 8) * 8)
    nb = pl.cdiv(b_total, blk)
    b_pad = nb * blk
    if b_pad != b_total:
        x = jnp.pad(x, ((0, b_pad - b_total), (0, 0)))
        labs = jnp.pad(labs, ((0, b_pad - b_total), (0, 0)))

    kernel = functools.partial(lcpn_kernel, b_total=b_total)

    out_shapes = (
        jax.ShapeDtypeStruct((b_pad, NPAD), jnp.float32),            # leaf probabilities
        jax.ShapeDtypeStruct((nb * LOSS_ROWS, NPAD), jnp.float32),   # per-block CE sums
    )
    leaf_pad, loss_part = pl.pallas_call(
        kernel,
        out_shape=out_shapes,
        grid=(nb,),
        in_specs=[
            pl.BlockSpec((blk, hidden), lambda i: (i, 0)),           # x block
            pl.BlockSpec((hidden, NPAD), lambda i: (0, 0)),          # packed W (bf16)
            pl.BlockSpec((1, NPAD), lambda i: (0, 0)),               # packed bias (f32)
            pl.BlockSpec((blk, NUM_LEVELS), lambda i: (i, 0)),       # per-level labels
        ],
        out_specs=[
            pl.BlockSpec((blk, NPAD), lambda i: (i, 0)),
            pl.BlockSpec((LOSS_ROWS, NPAD), lambda i: (i, 0)),
        ],
        compiler_params=pltpu.CompilerParams(
            dimension_semantics=("parallel",)),
    )(x, w_packed_bf16, b_packed, labs)

    logits = leaf_pad[:b_total, :NUM_LEAF]            # matches torch: stacked path products
    loss = jnp.sum(loss_part[0::LOSS_ROWS, 0]) / b_total
    return logits, loss


# ----------------------- pure-JAX reference (check) ----------------------
def reference_forward(x, labels, w_packed_bf16, b_packed):
    w = w_packed_bf16[:, :N_TOTAL]
    b = b_packed[0, :N_TOTAL]
    logits_all = jnp.dot(x.astype(jnp.bfloat16), w,
                         preferred_element_type=jnp.float32) + b
    lvl_maps = jnp.asarray(PATHS, jnp.int32)
    labs = lvl_maps[labels]                           # (B, NUM_LEVELS)

    def ce(lg, y):
        return -jnp.mean(jnp.take_along_axis(jax.nn.log_softmax(lg, axis=-1),
                                             y[:, None], axis=-1)[:, 0])

    loss = 0.0
    for lvl in range(NUM_LEVELS):
        lg = logits_all[:, OFFSETS[lvl]:OFFSETS[lvl] + N_LVL[lvl]]
        loss = loss + ce(lg, labs[:, lvl])

    leaf_cols = []
    for path in LEAF_PATHS_ABS:
        p = jnp.ones((x.shape[0],), jnp.float32)
        for idx in path:
            p = p * jax.nn.sigmoid(logits_all[:, idx])
        leaf_cols.append(p)
    leaf = jnp.stack(leaf_cols, axis=1)
    loss = loss + ce(leaf, labs[:, NUM_LEVELS - 1])
    return leaf, loss


# --------------------------------- main ----------------------------------
if __name__ == "__main__":
    key = jax.random.PRNGKey(0)
    kx, kw, kb = jax.random.split(key, 3)

    x = jax.random.normal(kx, (B, HIDDEN), dtype=jnp.float32)
    labels = jnp.array([0, 1, 2, 3, 0, 1, 2, 3], dtype=jnp.int32)

    # deterministic parameter init: 6 x Linear(HIDDEN, 1), packed, zero-padded, bf16 weights
    w_real = 0.05 * jax.random.normal(kw, (HIDDEN, N_TOTAL), dtype=jnp.float32)
    b_real = 0.01 * jax.random.normal(kb, (1, N_TOTAL), dtype=jnp.float32)
    w_packed = jnp.pad(w_real, ((0, 0), (0, NPAD - N_TOTAL))).astype(jnp.bfloat16)
    b_packed = jnp.pad(b_real, ((0, 0), (0, NPAD - N_TOTAL)))

    fwd = jax.jit(lcpn_head_forward)
    logits, loss = fwd(x, labels, w_packed, b_packed)
    jax.block_until_ready((logits, loss))

    ref_logits, ref_loss = reference_forward(x, labels, w_packed, b_packed)
    assert logits.shape == (B, NUM_LEAF)
    assert jnp.allclose(logits, ref_logits, atol=1e-4), "leaf logits mismatch"
    assert jnp.allclose(loss, ref_loss, atol=1e-4), "loss mismatch"

    print("KERNEL_OK")
</pallas_src>

<mosaic_0001>
module attributes {stable_mosaic.version = 11 : i64} {
  func.func @lcpn_kernel(%arg0: i32, %arg1: memref<8x32xf32, #tpu.memory_space<vmem>>, %arg2: memref<32x128xbf16, #tpu.memory_space<vmem>>, %arg3: memref<1x128xf32, #tpu.memory_space<vmem>>, %arg4: memref<8x2xi32, #tpu.memory_space<vmem>>, %arg5: memref<8x128xf32, #tpu.memory_space<vmem>>, %arg6: memref<8x128xf32, #tpu.memory_space<vmem>>) attributes {dimension_semantics = [#tpu.dimension_semantics<parallel>], iteration_bounds = array<i64: 1>, scalar_prefetch = 0 : i64, scratch_operands = 0 : i64, tpu.core_type = #tpu.core_type<tc>, window_params = [{transform_indices = @transform_0, window_bounds = array<i64: 8, 32>}, {pipeline_mode = #tpu.pipeline_mode<synchronous>, transform_indices = @transform_1, window_bounds = array<i64: 32, 128>}, {pipeline_mode = #tpu.pipeline_mode<synchronous>, transform_indices = @transform_2, window_bounds = array<i64: 1, 128>}, {transform_indices = @transform_3, window_bounds = array<i64: 8, 2>}, {transform_indices = @transform_4, window_bounds = array<i64: 8, 128>}, {transform_indices = @transform_5, window_bounds = array<i64: 8, 128>}]} {
    %c0 = arith.constant 0 : index
    %c0_0 = arith.constant 0 : index
    %0 = vector.load %arg1[%c0, %c0_0] : memref<8x32xf32, #tpu.memory_space<vmem>>, vector<8x32xf32>
    %1 = arith.truncf %0 : vector<8x32xf32> to vector<8x32xbf16>
    %c0_1 = arith.constant 0 : index
    %c0_2 = arith.constant 0 : index
    %2 = vector.load %arg2[%c0_1, %c0_2] : memref<32x128xbf16, #tpu.memory_space<vmem>>, vector<32x128xbf16>
    %cst = arith.constant dense<0.000000e+00> : vector<8x128xf32>
    %3 = tpu.matmul %1, %2, %cst {dimension_numbers = #tpu.dot_dimension_numbers<[1], [0], [0], [1], [0, 0, 1, 1], [], []>} : vector<8x32xbf16>, vector<32x128xbf16>, vector<8x128xf32> -> vector<8x128xf32>
    %c0_3 = arith.constant 0 : index
    %c0_4 = arith.constant 0 : index
    %4 = vector.load %arg3[%c0_3, %c0_4] : memref<1x128xf32, #tpu.memory_space<vmem>>, vector<1x128xf32>
    %5 = vector.broadcast %4 : vector<1x128xf32> to vector<8x128xf32>
    %6 = arith.addf %3, %5 : vector<8x128xf32>
    %7 = arith.negf %6 : vector<8x128xf32>
    %8 = math.exp %7 : vector<8x128xf32>
    %cst_5 = arith.constant 1.000000e+00 : f32
    %9 = vector.broadcast %cst_5 : f32 to vector<8x128xf32>
    %10 = arith.addf %9, %8 : vector<8x128xf32>
    %11 = arith.divf %9, %10 : vector<8x128xf32>
    %12 = tpu.iota {dimensions = array<i32: 1>} : vector<8x128xi32>
    %13 = tpu.iota {dimensions = array<i32: 0>} : vector<128x128xi32>
    %14 = tpu.iota {dimensions = array<i32: 1>} : vector<128x128xi32>
    %cst_6 = arith.constant 0.000000e+00 : f32
    %15 = vector.broadcast %cst_6 : f32 to vector<128x128xf32>
    %c0_i32 = arith.constant 0 : i32
    %16 = vector.broadcast %c0_i32 : i32 to vector<128x128xi32>
    %17 = arith.cmpi eq, %13, %16 : vector<128x128xi32>
    %c0_i32_7 = arith.constant 0 : i32
    %18 = vector.broadcast %c0_i32_7 : i32 to vector<128x128xi32>
    %19 = arith.cmpi eq, %14, %18 : vector<128x128xi32>
    %20 = arith.andi %17, %19 : vector<128x128xi1>
    %cst_8 = arith.constant 1.000000e+00 : f32
    %21 = vector.broadcast %cst_8 : f32 to vector<128x128xf32>
    %22 = arith.select %20, %21, %15 : vector<128x128xi1>, vector<128x128xf32>
    %c0_i32_9 = arith.constant 0 : i32
    %23 = vector.broadcast %c0_i32_9 : i32 to vector<128x128xi32>
    %24 = arith.cmpi eq, %13, %23 : vector<128x128xi32>
    %c1_i32 = arith.constant 1 : i32
    %25 = vector.broadcast %c1_i32 : i32 to vector<128x128xi32>
    %26 = arith.cmpi eq, %14, %25 : vector<128x128xi32>
    %27 = arith.andi %24, %26 : vector<128x128xi1>
    %cst_10 = arith.constant 1.000000e+00 : f32
    %28 = vector.broadcast %cst_10 : f32 to vector<128x128xf32>
    %29 = arith.select %27, %28, %22 : vector<128x128xi1>, vector<128x128xf32>
    %c1_i32_11 = arith.constant 1 : i32
    %30 = vector.broadcast %c1_i32_11 : i32 to vector<128x128xi32>
    %31 = arith.cmpi eq, %13, %30 : vector<128x128xi32>
    %c2_i32 = arith.constant 2 : i32
    %32 = vector.broadcast %c2_i32 : i32 to vector<128x128xi32>
    %33 = arith.cmpi eq, %14, %32 : vector<128x128xi32>
    %34 = arith.andi %31, %33 : vector<128x128xi1>
    %cst_12 = arith.constant 1.000000e+00 : f32
    %35 = vector.broadcast %cst_12 : f32 to vector<128x128xf32>
    %36 = arith.select %34, %35, %29 : vector<128x128xi1>, vector<128x128xf32>
    %c1_i32_13 = arith.constant 1 : i32
    %37 = vector.broadcast %c1_i32_13 : i32 to vector<128x128xi32>
    %38 = arith.cmpi eq, %13, %37 : vector<128x128xi32>
    %c3_i32 = arith.constant 3 : i32
    %39 = vector.broadcast %c3_i32 : i32 to vector<128x128xi32>
    %40 = arith.cmpi eq, %14, %39 : vector<128x128xi32>
    %41 = arith.andi %38, %40 : vector<128x128xi1>
    %cst_14 = arith.constant 1.000000e+00 : f32
    %42 = vector.broadcast %cst_14 : f32 to vector<128x128xf32>
    %43 = arith.select %41, %42, %36 : vector<128x128xi1>, vector<128x128xf32>
    %cst_15 = arith.constant dense<0.000000e+00> : vector<8x128xf32>
    %44 = tpu.matmul %11, %43, %cst_15 {dimension_numbers = #tpu.dot_dimension_numbers<[1], [0], [0], [1], [0, 0, 1, 1], [], []>} : vector<8x128xf32>, vector<128x128xf32>, vector<8x128xf32> -> vector<8x128xf32>
    %cst_16 = arith.constant 0.000000e+00 : f32
    %45 = vector.broadcast %cst_16 : f32 to vector<128x128xf32>
    %c2_i32_17 = arith.constant 2 : i32
    %46 = vector.broadcast %c2_i32_17 : i32 to vector<128x128xi32>
    %47 = arith.cmpi eq, %13, %46 : vector<128x128xi32>
    %c0_i32_18 = arith.constant 0 : i32
    %48 = vector.broadcast %c0_i32_18 : i32 to vector<128x128xi32>
    %49 = arith.cmpi eq, %14, %48 : vector<128x128xi32>
    %50 = arith.andi %47, %49 : vector<128x128xi1>
    %cst_19 = arith.constant 1.000000e+00 : f32
    %51 = vector.broadcast %cst_19 : f32 to vector<128x128xf32>
    %52 = arith.select %50, %51, %45 : vector<128x128xi1>, vector<128x128xf32>
    %c3_i32_20 = arith.constant 3 : i32
    %53 = vector.broadcast %c3_i32_20 : i32 to vector<128x128xi32>
    %54 = arith.cmpi eq, %13, %53 : vector<128x128xi32>
    %c1_i32_21 = arith.constant 1 : i32
    %55 = vector.broadcast %c1_i32_21 : i32 to vector<128x128xi32>
    %56 = arith.cmpi eq, %14, %55 : vector<128x128xi32>
    %57 = arith.andi %54, %56 : vector<128x128xi1>
    %cst_22 = arith.constant 1.000000e+00 : f32
    %58 = vector.broadcast %cst_22 : f32 to vector<128x128xf32>
    %59 = arith.select %57, %58, %52 : vector<128x128xi1>, vector<128x128xf32>
    %c4_i32 = arith.constant 4 : i32
    %60 = vector.broadcast %c4_i32 : i32 to vector<128x128xi32>
    %61 = arith.cmpi eq, %13, %60 : vector<128x128xi32>
    %c2_i32_23 = arith.constant 2 : i32
    %62 = vector.broadcast %c2_i32_23 : i32 to vector<128x128xi32>
    %63 = arith.cmpi eq, %14, %62 : vector<128x128xi32>
    %64 = arith.andi %61, %63 : vector<128x128xi1>
    %cst_24 = arith.constant 1.000000e+00 : f32
    %65 = vector.broadcast %cst_24 : f32 to vector<128x128xf32>
    %66 = arith.select %64, %65, %59 : vector<128x128xi1>, vector<128x128xf32>
    %c5_i32 = arith.constant 5 : i32
    %67 = vector.broadcast %c5_i32 : i32 to vector<128x128xi32>
    %68 = arith.cmpi eq, %13, %67 : vector<128x128xi32>
    %c3_i32_25 = arith.constant 3 : i32
    %69 = vector.broadcast %c3_i32_25 : i32 to vector<128x128xi32>
    %70 = arith.cmpi eq, %14, %69 : vector<128x128xi32>
    %71 = arith.andi %68, %70 : vector<128x128xi1>
    %cst_26 = arith.constant 1.000000e+00 : f32
    %72 = vector.broadcast %cst_26 : f32 to vector<128x128xf32>
    %73 = arith.select %71, %72, %66 : vector<128x128xi1>, vector<128x128xf32>
    %cst_27 = arith.constant dense<0.000000e+00> : vector<8x128xf32>
    %74 = tpu.matmul %11, %73, %cst_27 {dimension_numbers = #tpu.dot_dimension_numbers<[1], [0], [0], [1], [0, 0, 1, 1], [], []>} : vector<8x128xf32>, vector<128x128xf32>, vector<8x128xf32> -> vector<8x128xf32>
    %75 = arith.mulf %44, %74 : vector<8x128xf32>
    %c0_28 = arith.constant 0 : index
    %c0_29 = arith.constant 0 : index
    %76 = vector.load %arg5[%c0_28, %c0_29] : memref<8x128xf32, #tpu.memory_space<vmem>>, vector<8x128xf32>
    tpu.vector_store %arg5[%c0_28, %c0_29], %75 {strides = array<i32>} : memref<8x128xf32, #tpu.memory_space<vmem>>, vector<8x128xf32>,
    %c0_30 = arith.constant 0 : index
    %c0_31 = arith.constant 0 : index
    %77 = vector.load %arg4[%c0_30, %c0_31] : memref<8x2xi32, #tpu.memory_space<vmem>>, vector<8x2xi32>
    %78 = vector.extract_strided_slice %77 {offsets = [0, 0], sizes = [8, 1], strides = [1, 1]} : vector<8x2xi32> to vector<8x1xi32>
    %79 = vector.extract_strided_slice %77 {offsets = [0, 1], sizes = [8, 1], strides = [1, 1]} : vector<8x2xi32> to vector<8x1xi32>
    %c0_i32_32 = arith.constant 0 : i32
    %80 = vector.broadcast %c0_i32_32 : i32 to vector<8x1xi32>
    %81 = arith.addi %80, %78 : vector<8x1xi32>
    %82 = vector.broadcast %81 : vector<8x1xi32> to vector<8x128xi32>
    %83 = arith.cmpi eq, %12, %82 : vector<8x128xi32>
    %cst_33 = arith.constant 1.000000e+00 : f32
    %cst_34 = arith.constant 0.000000e+00 : f32
    %84 = vector.broadcast %cst_33 : f32 to vector<8x128xf32>
    %85 = vector.broadcast %cst_34 : f32 to vector<8x128xf32>
    %86 = arith.select %83, %84, %85 : vector<8x128xi1>, vector<8x128xf32>
    %c2_i32_35 = arith.constant 2 : i32
    %87 = vector.broadcast %c2_i32_35 : i32 to vector<8x1xi32>
    %88 = arith.addi %87, %79 : vector<8x1xi32>
    %89 = vector.broadcast %88 : vector<8x1xi32> to vector<8x128xi32>
    %90 = arith.cmpi eq, %12, %89 : vector<8x128xi32>
    %cst_36 = arith.constant 1.000000e+00 : f32
    %cst_37 = arith.constant 0.000000e+00 : f32
    %91 = vector.broadcast %cst_36 : f32 to vector<8x128xf32>
    %92 = vector.broadcast %cst_37 : f32 to vector<8x128xf32>
    %93 = arith.select %90, %91, %92 : vector<8x128xi1>, vector<8x128xf32>
    %94 = vector.broadcast %79 : vector<8x1xi32> to vector<8x128xi32>
    %95 = arith.cmpi eq, %12, %94 : vector<8x128xi32>
    %cst_38 = arith.constant 1.000000e+00 : f32
    %cst_39 = arith.constant 0.000000e+00 : f32
    %96 = vector.broadcast %cst_38 : f32 to vector<8x128xf32>
    %97 = vector.broadcast %cst_39 : f32 to vector<8x128xf32>
    %98 = arith.select %95, %96, %97 : vector<8x128xi1>, vector<8x128xf32>
    %c0_i32_40 = arith.constant 0 : i32
    %99 = vector.broadcast %c0_i32_40 : i32 to vector<8x128xi32>
    %100 = arith.cmpi sge, %12, %99 : vector<8x128xi32>
    %c2_i32_41 = arith.constant 2 : i32
    %101 = vector.broadcast %c2_i32_41 : i32 to vector<8x128xi32>
    %102 = arith.cmpi slt, %12, %101 : vector<8x128xi32>
    %103 = arith.andi %100, %102 : vector<8x128xi1>
    %cst_42 = arith.constant 0.000000e+00 : f32
    %cst_43 = arith.constant -1.000000e+30 : f32
    %104 = vector.broadcast %cst_42 : f32 to vector<8x128xf32>
    %105 = vector.broadcast %cst_43 : f32 to vector<8x128xf32>
    %106 = arith.select %103, %104, %105 : vector<8x128xi1>, vector<8x128xf32>
    %c2_i32_44 = arith.constant 2 : i32
    %107 = vector.broadcast %c2_i32_44 : i32 to vector<8x128xi32>
    %108 = arith.cmpi sge, %12, %107 : vector<8x128xi32>
    %c6_i32 = arith.constant 6 : i32
    %109 = vector.broadcast %c6_i32 : i32 to vector<8x128xi32>
    %110 = arith.cmpi slt, %12, %109 : vector<8x128xi32>
    %111 = arith.andi %108, %110 : vector<8x128xi1>
    %cst_45 = arith.constant 0.000000e+00 : f32
    %cst_46 = arith.constant -1.000000e+30 : f32
    %112 = vector.broadcast %cst_45 : f32 to vector<8x128xf32>
    %113 = vector.broadcast %cst_46 : f32 to vector<8x128xf32>
    %114 = arith.select %111, %112, %113 : vector<8x128xi1>, vector<8x128xf32>
    %c4_i32_47 = arith.constant 4 : i32
    %115 = vector.broadcast %c4_i32_47 : i32 to vector<8x128xi32>
    %116 = arith.cmpi slt, %12, %115 : vector<8x128xi32>
    %cst_48 = arith.constant 0.000000e+00 : f32
    %cst_49 = arith.constant -1.000000e+30 : f32
    %117 = vector.broadcast %cst_48 : f32 to vector<8x128xf32>
    %118 = vector.broadcast %cst_49 : f32 to vector<8x128xf32>
    %119 = arith.select %116, %117, %118 : vector<8x128xi1>, vector<8x128xf32>
    %120 = arith.addf %6, %106 : vector<8x128xf32>
    %cst_50 = arith.constant dense<0xFF800000> : vector<8xf32>
    %121 = vector.multi_reduction <maximumf>, %120, %cst_50 [1] : vector<8x128xf32> to vector<8xf32>
    %122 = vector.shape_cast %121 : vector<8xf32> to vector<8x1xf32>
    %123 = vector.broadcast %122 : vector<8x1xf32> to vector<8x128xf32>
    %124 = arith.subf %120, %123 : vector<8x128xf32>
    %125 = math.exp %124 : vector<8x128xf32>
    %cst_51 = arith.constant dense<0.000000e+00> : vector<8xf32>
    %126 = vector.multi_reduction <add>, %125, %cst_51 [1] : vector<8x128xf32> to vector<8xf32>
    %127 = vector.shape_cast %126 : vector<8xf32> to vector<8x1xf32>
    %128 = math.log %127 : vector<8x1xf32>
    %129 = arith.addf %122, %128 : vector<8x1xf32>
    %130 = arith.mulf %86, %120 : vector<8x128xf32>
    %cst_52 = arith.constant dense<0.000000e+00> : vector<8xf32>
    %131 = vector.multi_reduction <add>, %130, %cst_52 [1] : vector<8x128xf32> to vector<8xf32>
    %132 = vector.shape_cast %131 : vector<8xf32> to vector<8x1xf32>
    %133 = arith.subf %129, %132 : vector<8x1xf32>
    %134 = arith.addf %6, %114 : vector<8x128xf32>
    %cst_53 = arith.constant dense<0xFF800000> : vector<8xf32>
    %135 = vector.multi_reduction <maximumf>, %134, %cst_53 [1] : vector<8x128xf32> to vector<8xf32>
    %136 = vector.shape_cast %135 : vector<8xf32> to vector<8x1xf32>
    %137 = vector.broadcast %136 : vector<8x1xf32> to vector<8x128xf32>
    %138 = arith.subf %134, %137 : vector<8x128xf32>
    %139 = math.exp %138 : vector<8x128xf32>
    %cst_54 = arith.constant dense<0.000000e+00> : vector<8xf32>
    %140 = vector.multi_reduction <add>, %139, %cst_54 [1] : vector<8x128xf32> to vector<8xf32>
    %141 = vector.shape_cast %140 : vector<8xf32> to vector<8x1xf32>
    %142 = math.log %141 : vector<8x1xf32>
    %143 = arith.addf %136, %142 : vector<8x1xf32>
    %144 = arith.mulf %93, %134 : vector<8x128xf32>
    %cst_55 = arith.constant dense<0.000000e+00> : vector<8xf32>
    %145 = vector.multi_reduction <add>, %144, %cst_55 [1] : vector<8x128xf32> to vector<8xf32>
    %146 = vector.shape_cast %145 : vector<8xf32> to vector<8x1xf32>
    %147 = arith.subf %143, %146 : vector<8x1xf32>
    %148 = arith.addf %133, %147 : vector<8x1xf32>
    %149 = arith.addf %75, %119 : vector<8x128xf32>
    %cst_56 = arith.constant dense<0xFF800000> : vector<8xf32>
    %150 = vector.multi_reduction <maximumf>, %149, %cst_56 [1] : vector<8x128xf32> to vector<8xf32>
    %151 = vector.shape_cast %150 : vector<8xf32> to vector<8x1xf32>
    %152 = vector.broadcast %151 : vector<8x1xf32> to vector<8x128xf32>
    %153 = arith.subf %149, %152 : vector<8x128xf32>
    %154 = math.exp %153 : vector<8x128xf32>
    %cst_57 = arith.constant dense<0.000000e+00> : vector<8xf32>
    %155 = vector.multi_reduction <add>, %154, %cst_57 [1] : vector<8x128xf32> to vector<8xf32>
    %156 = vector.shape_cast %155 : vector<8xf32> to vector<8x1xf32>
    %157 = math.log %156 : vector<8x1xf32>
    %158 = arith.addf %151, %157 : vector<8x1xf32>
    %159 = arith.mulf %98, %149 : vector<8x128xf32>
    %cst_58 = arith.constant dense<0.000000e+00> : vector<8xf32>
    %160 = vector.multi_reduction <add>, %159, %cst_58 [1] : vector<8x128xf32> to vector<8xf32>
    %161 = vector.shape_cast %160 : vector<8xf32> to vector<8x1xf32>
    %162 = arith.subf %158, %161 : vector<8x1xf32>
    %163 = arith.addf %148, %162 : vector<8x1xf32>
    %164 = tpu.iota {dimensions = array<i32: 0>} : vector<8x1xi32>
    %c8_i32 = arith.constant 8 : i32
    %165 = arith.muli %arg0, %c8_i32 : i32
    %166 = vector.broadcast %165 : i32 to vector<8x1xi32>
    %167 = arith.addi %166, %164 : vector<8x1xi32>
    %c8_i32_59 = arith.constant 8 : i32
    %168 = vector.broadcast %c8_i32_59 : i32 to vector<8x1xi32>
    %169 = arith.cmpi slt, %167, %168 : vector<8x1xi32>
    %cst_60 = arith.constant 1.000000e+00 : f32
    %cst_61 = arith.constant 0.000000e+00 : f32
    %170 = vector.broadcast %cst_60 : f32 to vector<8x1xf32>
    %171 = vector.broadcast %cst_61 : f32 to vector<8x1xf32>
    %172 = arith.select %169, %170, %171 : vector<8x1xi1>, vector<8x1xf32>
    %173 = arith.mulf %163, %172 : vector<8x1xf32>
    %174 = vector.shape_cast %173 : vector<8x1xf32> to vector<1x8x1xf32>
    %cst_62 = arith.constant dense<0.000000e+00> : vector<1xf32>
    %175 = vector.multi_reduction <add>, %174, %cst_62 [1, 2] : vector<1x8x1xf32> to vector<1xf32>
    %176 = vector.shape_cast %175 : vector<1xf32> to vector<1x1x1xf32>
    %177 = vector.extract %176[0, 0, 0] : f32 from vector<1x1x1xf32>
    %178 = vector.broadcast %177 : f32 to vector<1x1xf32>
    %cst_63 = arith.constant 0.000000e+00 : f32
    %179 = vector.broadcast %cst_63 : f32 to vector<8x128xf32>
    %180 = vector.broadcast %178 : vector<1x1xf32> to vector<8x128xf32>
    %181 = arith.addf %179, %180 : vector<8x128xf32>
    %c0_64 = arith.constant 0 : index
    %c0_65 = arith.constant 0 : index
    %182 = vector.load %arg6[%c0_64, %c0_65] : memref<8x128xf32, #tpu.memory_space<vmem>>, vector<8x128xf32>
    tpu.vector_store %arg6[%c0_64, %c0_65], %181 {strides = array<i32>} : memref<8x128xf32, #tpu.memory_space<vmem>>, vector<8x128xf32>,
    return
  }
  func.func @transform_0(%arg0: i32) -> (i32, i32) {
    %c0_i32 = arith.constant 0 : i32
    %c0_i32_0 = arith.constant 0 : i32
    return %arg0, %c0_i32 : i32, i32
  }
  func.func @transform_1(%arg0: i32) -> (i32, i32) {
    %c0_i32 = arith.constant 0 : i32
    %c0_i32_0 = arith.constant 0 : i32
    %c0_i32_1 = arith.constant 0 : i32
    return %c0_i32, %c0_i32_0 : i32, i32
  }
  func.func @transform_2(%arg0: i32) -> (i32, i32) {
    %c0_i32 = arith.constant 0 : i32
    %c0_i32_0 = arith.constant 0 : i32
    %c0_i32_1 = arith.constant 0 : i32
    return %c0_i32, %c0_i32_0 : i32, i32
  }
  func.func @transform_3(%arg0: i32) -> (i32, i32) {
    %c0_i32 = arith.constant 0 : i32
    %c0_i32_0 = arith.constant 0 : i32
    return %arg0, %c0_i32 : i32, i32
  }
  func.func @transform_4(%arg0: i32) -> (i32, i32) {
    %c0_i32 = arith.constant 0 : i32
    %c0_i32_0 = arith.constant 0 : i32
    return %arg0, %c0_i32 : i32, i32
  }
  func.func @transform_5(%arg0: i32) -> (i32, i32) {
    %c0_i32 = arith.constant 0 : i32
    %c0_i32_0 = arith.constant 0 : i32
    return %arg0, %c0_i32 : i32, i32
  }
}

</mosaic_0001>

<bundles_post_ra>
// kernel: lcpn_head_forward.1
= control target key start
LH: loop header
LB: loop body
LE: loop exit
PB: predicated region body
PF: predicated region fallthrough
CT: control target
= control target key end

     0   :  { %v772_v0 = vmov 0.0   ;;  %vm773_vm0 = vmmov 0   ;;  %vm45_vm1 = vcmask 261120   ;;  %v95_v5 = vlaneseq  ;;  %s880_s1 = inlined_call_operand.vmem [shape: bf16[32,128], index: 1, kind: input, shape index: {}]   ;;  %s881_s0 = inlined_call_operand.vmem [shape: f32[8,32], index: 0, kind: input, shape index: {}]   ;;  %s882_s2 = inlined_call_operand.vmem [shape: f32[1,128], index: 2, kind: input, shape index: {}]   ;;  %s883_s3 = inlined_call_operand.vmem [shape: s32[8,2], index: 3, kind: input, shape index: {}]   ;;  %s884_s4 = inlined_call_operand.vmem [shape: f32[8,128], index: 4, kind: output, shape index: {0}]   ;;  %s885_s5 = inlined_call_operand.vmem [shape: f32[8,128], index: 5, kind: output, shape index: {1}]  }
   0x1   :  { %726 = vmatprep.subr.bf16.mxu0 %v772_v0  ;;  %v754_v1 = vld [vmem:[%s880_s1 + $0x8] sm:$0xff]   ;;  %730 = vmatprep.mubr.msk.bf16.mxu0 %vm773_vm0, %v772_v0  ;;  %v755_v2 = vld [vmem:[%s880_s1] sm:$0xff]   ;;  %v774_v6 = vmov 1   ;;  %v775_v20 = vmov -1e+30   ;;  %v776_v35 = vmov 0  }
   0x2   :  { %734 = vmatprep.subr.mxu1 %v772_v0  ;;  %736 = vmatprep.mubr.msk.f32.mxu1 %vm773_vm0, %v772_v0  ;;  %v20_v3 = vld [vmem:[%s881_s0] sm:$0xff]  ;;  %v824_v7 = vand.u32 127, %v95_v5  ;;  %v98_v8 = vshrl.u32 %v95_v5, 7 }
   0x3   :  { %727 = vmatpush3.bf16.msra.mxu0 %v754_v1  ;;  %v21_v4 = vpack.c.bf16 %v20_v3, %v20_v3  ;;  %752 = vset.pattern.permute.xlu0 %v774_v6  ;;  %v714_v18 = vld [vmem:[%s882_s2] ss:$0 sm:$0xff] }
   0x4   :  { %728 = vmatprep.subr.bf16.mxu0 %v772_v0  ;;  %vm114_vm2 = vcmp.eq.s32.totalorder %v98_v8, 0  ;;  %vm130_vm3 = vcmp.eq.s32.totalorder %v824_v7, 0  ;;  %vm163_vm5 = vcmp.eq.s32.totalorder %v824_v7, 1  ;;  %vm196_vm7 = vcmp.eq.s32.totalorder %v98_v8, 1  ;;  %v612_v32 = vld [vmem:[%s883_s3] sm:$0xff]  ;;  %751 = vset.pattern.permute.xlu1 %v776_v35 }
   0x5   :  { %vm131_vm4 = vmand %vm114_vm2, %vm130_vm3  ;;  %vm212_vm8 = vcmp.eq.s32.totalorder %v824_v7, 2  ;;  %vm245_vm10 = vcmp.eq.s32.totalorder %v824_v7, 3  ;;  %vm348_vm11 = vcmp.eq.s32.totalorder %v98_v8, 2  ;;  %vm396_vm12 = vcmp.eq.s32.totalorder %v98_v8, 3 }
   0x6   :  { %v147_v9 = vsel %vm131_vm4, 1.0, %v772_v0  ;;  %vm164_vm6 = vmand %vm114_vm2, %vm163_vm5  ;;  %vm444_vm14 = vcmp.eq.s32.totalorder %v98_v8, 4  ;;  %v618_v33 = vadd.s32 2, %v612_v32 }
   0x7   :  { %729 = vmatpush3.bf16.msra.mxu0 %v755_v2  ;;  %v180_v10 = vsel %vm164_vm6, 1.0, %v147_v9  ;;  %vm213_vm9 = vmand %vm196_vm7, %vm212_vm8 }
   0x8   :  { %v229_v11 = vsel %vm213_vm9, 1.0, %v180_v10  ;;  %vm246_vm13 = vmand %vm196_vm7, %vm245_vm10  ;;  %vm634_vm7 = vcmp.lt.s32.totalorder %v824_v7, 6  ;;  %vm637_vm9 = vcmp.lt.s32.totalorder %v824_v7, 4 }
   0x9   :  { %v262_v12 = vsel %vm246_vm13, 1.0, %v229_v11  ;;  %vm364_vm15 = vmand %vm348_vm11, %vm130_vm3  ;;  %vm630_vm3 = vcmp.lt.s32.totalorder %v824_v7, 2  ;;  %v638_v44 = vsel %vm637_vm9, 0.0, %v775_v20 }
   0xa   :  { %731 = vmatmul.mubr.msk.bf16.vlgmr.msra.gmra.mxu0 %vm45_vm1, %v21_v4  ;;  %vm492_vm1 = vcmp.eq.s32.totalorder %v98_v8, 5  ;;  %735 = vmatpush3.msra.mxu1 %v262_v12  ;;  %vm412_vm2 = vmand %vm396_vm12, %vm163_vm5  ;;  %v380_v13 = vsel %vm364_vm15, 1.0, %v772_v0  ;;  %vm633_vm5 = vcmp.ge.s32.totalorder %v824_v7, 2  ;;  %v632_v21 = vsel %vm630_vm3, 0.0, %v775_v20 }
   0xb   :  { %vm460_vm4 = vmand %vm444_vm14, %vm212_vm8  ;;  %739 = vmatprep.subr.mxu1 %v772_v0  ;;  %v428_v14 = vsel %vm412_vm2, 1.0, %v380_v13  ;;  %vm692_vm12 = vcmask 7168  }
   0xc   :  { %vm849_vm6 = vmand %vm492_vm1, %vm245_vm10  ;;  %v476_v16 = vsel %vm460_vm4, 1.0, %v428_v14 }
   0xd   :  { %v524_v17 = vsel %vm849_vm6, 1.0, %v476_v16  ;;  %vm635_vm8 = vmand %vm633_vm5, %vm634_vm7 }
   0xe   :  { %v636_v27 = vsel %vm635_vm8, 0.0, %v775_v20 }
  0xca   :  { %v83_v19 = vpop.f32.mrf.mxu0 }
  0xcb   :  { %v84_v22 = vadd.f32 %v714_v18, %v83_v19 }
  0xcc   :  { %v732_v23 = vpop.f32.mrf.mxu0 }
  0xcd   :  { %v718_v24 = vmul.f32 -1.442695, %v84_v22  ;;  %v639_v25 = vadd.f32 %v632_v21, %v84_v22  ;;  %v654_v29 = vadd.f32 %v636_v27, %v84_v22 }
  0xce   :  { %v86_v26 = vpop.f32.mrf.mxu0 }
  0xcf   :  { %756 = vpow2.f32 %v718_v24  ;;  %640 = vmax.xlane.f32.xlu0 %v639_v25 }
  0xd0   :  { %v733_v28 = vpop.f32.mrf.mxu0 }
  0xd3   :  { %655 = vmax.xlane.f32.xlu0 %v654_v29 }
  0xdc   :  { %v757_v30 = vpop.eup %756 }
  0xdd   :  { %v92_v31 = vadd.f32 1.0, %v757_v30 }
  0xdf   :  { %758 = vrcp.f32 %v92_v31 }
  0xe9   :  { %620 = vperm.xlu0 %752, %v618_v33  }
  0xec   :  { %v759_v34 = vpop.eup %758 }
  0xed   :  { %737 = vmatmul.mubr.f32.vlgmr.msra.gmra.mxu1 %v759_v34 }
  0xee   :  { %740 = vmatpush3.msra.mxu1 %v524_v17  ;;  %741 = vmatprep.mubr.msk.f32.mxu1 %vm773_vm0, %v772_v0 }
  0xf1   :  { %742 = vmatmul.mubr.f32.vlgmr.msra.gmra.mxu1 %v759_v34 }
 0x158   :  { %v641_v36 = vpop.xlane.xlu0 %640 }
 0x159   :  { %v642_v48 = vsub.f32 %v639_v25, %v641_v36 }
 0x15b   :  { %v643_v49 = vmul.f32 1.442695, %v642_v48 }
 0x15c   :  { %v656_v37 = vpop.xlane.xlu0 %655 }
 0x15d   :  { %v657_v38 = vsub.f32 %v654_v29, %v656_v37 }
 0x15f   :  { %v658_v39 = vmul.f32 1.442695, %v657_v38 }
 0x161   :  { %760 = vpow2.f32 %v658_v39 }
 0x162   :  { %762 = vpow2.f32 %v643_v49 }
 0x164   :  { %v621_v55 = vpop.permute.xlu0 %620 }
 0x165   :  { %vm622_vm10 = vcmp.eq.s32.totalorder %v824_v7, %v621_v55 }
 0x166   :  { %v623_v60 = vsel %vm622_vm10, 1.0, %v772_v0 }
 0x167   :  { %v665_v61 = vmul.f32 %v654_v29, %v623_v60 }
 0x16e   :  { %v761_v40 = vpop.eup %760 }
 0x16f   :  { %660 = vadd.xlane.f32.xlu0 %v761_v40  ;;  %v763_v50 = vpop.eup %762 }
 0x1ad   :  { %v344_v41 = vpop.f32.mrf.mxu1 }
 0x1af   :  { %v738_v42 = vpop.f32.mrf.mxu1 }
 0x1b1   :  { %v606_v43 = vpop.f32.mrf.mxu1 }
 0x1b2   :  { %v610_v45 = vmul.f32 %v606_v43, %v344_v41 }
 0x1b3   :  { %v743_v46 = vpop.f32.mrf.mxu1 }
 0x1b4   :  { %611 = vst [vmem:[%s884_s4] sm:$0xff] %v610_v45  ;;  %v670_v47 = vadd.f32 %v638_v44, %v610_v45 }
 0x1b6   :  { %671 = vmax.xlane.f32.xlu1 %v670_v47 }
 0x1c7   :  { %614 = vperm.xlu1 %751, %v612_v32  }
 0x1cb   :  { %753 = vset.pattern.permute.xlu1 %v774_v6 }
 0x1cc   :  { %625 = vperm.xlu1 %753, %v612_v32  }
 0x1f0   :  { %645 = vadd.xlane.f32.xlu1 %v763_v50 }
 0x1f8   :  { %v661_v1 = vpop.xlane.xlu0 %660 }
 0x23f   :  { %v672_v51 = vpop.xlane.xlu1 %671 }
 0x240   :  { %v673_v52 = vsub.f32 %v670_v47, %v672_v51 }
 0x242   :  { %v674_v53 = vmul.f32 1.442695, %v673_v52 }
 0x243   :  { %v615_v54 = vpop.permute.xlu1 %614 }
 0x244   :  { %764 = vpow2.f32 %v674_v53  ;;  %vm616_vm0 = vcmp.eq.s32.totalorder %v824_v7, %v615_v54 }
 0x245   :  { %v617_v57 = vsel %vm616_vm0, 1.0, %v772_v0  ;;  %766 = vlog2.f32 %v661_v1 }
 0x246   :  { %v650_v59 = vmul.f32 %v639_v25, %v617_v57 }
 0x247   :  { %v626_v58 = vpop.permute.xlu1 %625 }
 0x248   :  { %vm627_vm11 = vcmp.eq.s32.totalorder %v824_v7, %v626_v58 }
 0x249   :  { %v628_v62 = vsel %vm627_vm11, 1.0, %v772_v0 }
 0x24a   :  { %v681_v63 = vmul.f32 %v670_v47, %v628_v62 }
 0x251   :  { %v765_v56 = vpop.eup %764 }
 0x252   :  { %676 = vadd.xlane.f32.xlu1 %v765_v56  ;;  %v767_v4 = vpop.eup %766 }
 0x253   :  { %v663_v8 = vmul.f32 0.6931472, %v767_v4 }
 0x255   :  { %v664_v7 = vadd.f32 %v663_v8, %v656_v37 }
 0x256   :  { %651 = vadd.xlane.f32.xlu1 %v650_v59 }
 0x25a   :  { %666 = vadd.xlane.f32.xlu1 %v665_v61 }
 0x25e   :  { %682 = vadd.xlane.f32.xlu1 %v681_v63 }
 0x279   :  { %v646_v2 = vpop.xlane.xlu1 %645 }
 0x27a   :  { %768 = vlog2.f32 %v646_v2 }
 0x287   :  { %v769_v6 = vpop.eup %768 }
 0x288   :  { %v648_v9 = vmul.f32 0.6931472, %v769_v6 }
 0x28a   :  { %v649_v13 = vadd.f32 %v648_v9, %v641_v36 }
 0x2db   :  { %v677_v3 = vpop.xlane.xlu1 %676 }
 0x2dc   :  { %770 = vlog2.f32 %v677_v3 }
 0x2df   :  { %v652_v5 = vpop.xlane.xlu1 %651 }
 0x2e0   :  { %v653_v14 = vsub.f32 %v649_v13, %v652_v5 }
 0x2e3   :  { %v667_v10 = vpop.xlane.xlu1 %666 }
 0x2e4   :  { %v668_v0 = vsub.f32 %v664_v7, %v667_v10 }
 0x2e6   :  { %v669_v17 = vadd.f32 %v668_v0, %v653_v14 }
 0x2e7   :  { %v683_v16 = vpop.xlane.xlu1 %682 }
 0x2e9   :  { %v771_v11 = vpop.eup %770 }
 0x2ea   :  { %v679_v12 = vmul.f32 0.6931472, %v771_v11 }
 0x2ec   :  { %v680_v15 = vadd.f32 %v679_v12, %v672_v51 }
 0x2ee   :  { %v684_v18 = vsub.f32 %v680_v15, %v683_v16 }
 0x2f0   :  { %v685_v19 = vadd.f32 %v684_v18, %v669_v17 }
 0x2f2   :  { %v693_v20 = vsel %vm692_vm12, %v685_v19, 0.0 }
 0x2f3   :  { %694 = vadd.xlane.f32.xlu1 %v693_v20 }
 0x37c   :  { %v695_v21 = vpop.xlane.xlu1 %694 }
 0x37d   :  { %v696_v22 = vrot.slane %v695_v21, 4 }
 0x37f   :  { %v697_v23 = vadd.f32 %v696_v22, %v695_v21 }
 0x381   :  { %v698_v24 = vrot.slane %v697_v23, 2 }
 0x383   :  { %v699_v25 = vadd.f32 %v698_v24, %v697_v23 }
 0x385   :  { %v700_v26 = vrot.slane %v699_v25, 1 }
 0x387   :  { %v701_v27 = vadd.f32 %v700_v26, %v699_v25 }
 0x389   :  { %744 = vpush %v701_v27 }
 0x3ba   :  { %s745_s4 = spop %744 }
 0x3bb   :  { %v703_v28 = vstv %s745_s4 }
 0x3bc   :  { %705 = vst [vmem:[%s885_s5] sm:$0xff] %v703_v28 }

</bundles_post_ra>
